<compile_context>
chip_gen: v5e
topology: v5e:2x2
jax: 0.10.0
libtpu: 0.0.40
codegen_flags: <defaults>
</compile_context>

<pallas_src>
import jax
import jax.numpy as jnp
from jax.experimental import pallas as pl
from jax.experimental.pallas import tpu as pltpu

NEG_SLOPE = 0.2


def _leaky_relu(h):
    # slope < 1  =>  leaky_relu(h) == max(h, slope*h): one vmul + one vmax.
    return jnp.maximum(h, NEG_SLOPE * h)


def ebm_mlp_kernel(xT_ref,
                   w1T_ref, b1_ref,
                   w2T_ref, b2_ref,
                   w3T_ref, b3_ref,
                   w4_ref, b4_ref,
                   out_ref):
    xT = xT_ref[...]                                          # (2, bt) f32

    # Layer 1 (K=2): two VPU broadcast-FMAs, skip the MXU.
    #   (128,1) columns of w1^T  x  (1,bt) rows of x^T  ->  (128, bt)
    h = (w1T_ref[:, 0:1] * xT[0:1, :]
         + w1T_ref[:, 1:2] * xT[1:2, :]
         + b1_ref[...])                                       # (128, bt) f32
    h = _leaky_relu(h)

    # Layers 2 & 3: dense 128x128 MXU matmuls, bf16 operands, f32 accumulate.
    h = jnp.dot(w2T_ref[...], h.astype(jnp.bfloat16),
                preferred_element_type=jnp.float32) + b2_ref[...]
    h = _leaky_relu(h)
    h = jnp.dot(w3T_ref[...], h.astype(jnp.bfloat16),
                preferred_element_type=jnp.float32) + b3_ref[...]
    h = _leaky_relu(h)

    # Layer 4 (N=1): VPU multiply + sublane (XLU) reduce instead of MXU.
    e = jnp.sum(h * w4_ref[...], axis=0, keepdims=True) + b4_ref[0, 0]
    out_ref[...] = e.astype(out_ref.dtype)                    # (1, bt) lane-dense


def _round_up(n, m):
    return ((n + m - 1) // m) * m


def ebm_forward(x, params, *, block_batch=2048):
    """x: (B, 2) float32.  Returns (B, 1) float32 energies."""
    B = x.shape[0]
    (w1, b1, w2, b2, w3, b3, w4, b4) = params

    # Pre-pack params into the batch-on-lanes layout (tiny, done once).
    w1T = w1.T                                   # (128, 2)   f32
    b1c = b1.reshape(128, 1)                     # (128, 1)   f32
    w2T = w2.T.astype(jnp.bfloat16)              # (128, 128) bf16
    b2c = b2.reshape(128, 1)                     # (128, 1)   f32
    w3T = w3.T.astype(jnp.bfloat16)              # (128, 128) bf16
    b3c = b3.reshape(128, 1)                     # (128, 1)   f32
    w4c = w4.reshape(128, 1)                     # (128, 1)   f32
    b4s = b4.reshape(1, 1)                       # (1, 1)     f32 (SMEM scalar)

    # Batch tile: multiple of 128 lanes, capped by block_batch, sized so the
    # grid has >=2 steps whenever B > 128 (v7x dual-TC split of "parallel").
    bt = min(block_batch, max(128, _round_up((B + 1) // 2, 128)))
    b_pad = _round_up(B, bt)

    xT = x.T                                     # (2, B)
    if b_pad != B:
        xT = jnp.pad(xT, ((0, 0), (0, b_pad - B)))
    grid = (b_pad // bt,)

    const = lambda i: (0, 0)   # weights/biases: same block every step -> resident

    flops = 2 * b_pad * (2 * 128 + 128 * 128 + 128 * 128 + 128)
    bytes_accessed = (b_pad * (2 + 1) * 4                          # x in, e out
                      + 4 * (2 * 128 + 4 * 128 + 128 + 1)          # f32 params
                      + 2 * (2 * 128 * 128))                       # bf16 w2, w3

    out = pl.pallas_call(
        ebm_mlp_kernel,
        out_shape=jax.ShapeDtypeStruct((1, b_pad), jnp.float32),
        grid_spec=pltpu.PrefetchScalarGridSpec(
            num_scalar_prefetch=0,
            grid=grid,
            in_specs=[
                pl.BlockSpec((2, bt), lambda i: (0, i)),                  # x^T tile
                pl.BlockSpec((128, 2), const),                            # w1^T
                pl.BlockSpec((128, 1), const),                            # b1
                pl.BlockSpec((128, 128), const),                          # w2^T (bf16)
                pl.BlockSpec((128, 1), const),                            # b2
                pl.BlockSpec((128, 128), const),                          # w3^T (bf16)
                pl.BlockSpec((128, 1), const),                            # b3
                pl.BlockSpec((128, 1), const),                            # w4 (column)
                pl.BlockSpec((1, 1), const,
                             memory_space=pltpu.MemorySpace.SMEM),        # b4 scalar
            ],
            out_specs=pl.BlockSpec((1, bt), lambda i: (0, i)),
        ),
        compiler_params=pltpu.CompilerParams(
            dimension_semantics=("parallel",)),
        cost_estimate=pl.CostEstimate(
            flops=flops, bytes_accessed=bytes_accessed, transcendentals=0),
    )(xT, w1T, b1c, w2T, b2c, w3T, b3c, w4c, b4s)

    return out[:, :B].T                          # (B, 1)


def init_params(key):
    """Deterministic init mimicking PyTorch Linear default (uniform +/- 1/sqrt(fan_in))."""
    dims = [(2, 128), (128, 128), (128, 128), (128, 1)]
    params = []
    for fan_in, fan_out in dims:
        kw, kb, key = jax.random.split(key, 3)
        bound = 1.0 / jnp.sqrt(jnp.float32(fan_in))
        w = jax.random.uniform(kw, (fan_in, fan_out), jnp.float32, -bound, bound)
        b = jax.random.uniform(kb, (1, fan_out), jnp.float32, -bound, bound)
        params += [w, b]
    return tuple(params)


def reference_forward(x, params):
    (w1, b1, w2, b2, w3, b3, w4, b4) = params
    h = _leaky_relu(x @ w1 + b1)
    h = _leaky_relu(h @ w2 + b2)
    h = _leaky_relu(h @ w3 + b3)
    return h @ w4 + b4


if __name__ == "__main__":
    key = jax.random.PRNGKey(0)
    kx, kp = jax.random.split(key)
    params = init_params(kp)

    # Note: log_Z parameter of the PyTorch module is not used in forward(); omitted.

    # Small demo shape (2-D points, like the EBM toy data).
    B = 8
    x = jax.random.normal(kx, (B, 2), jnp.float32)
    out = jax.block_until_ready(ebm_forward(x, params))
    ref = reference_forward(x, params)
    assert out.shape == (B, 1)
    # bf16 MXU operands (f32 accumulation) -> loosened tolerance vs f32 reference.
    assert jnp.allclose(out, ref, atol=5e-2, rtol=5e-2), "mismatch vs. JAX reference (B=8)"

    # Exercise the multi-tile grid path (several 128-lane tiles + ragged-tail padding).
    B2 = 300
    x2 = jax.random.normal(kx, (B2, 2), jnp.float32)
    out2 = jax.block_until_ready(ebm_forward(x2, params, block_batch=128))
    ref2 = reference_forward(x2, params)
    assert out2.shape == (B2, 1)
    assert jnp.allclose(out2, ref2, atol=5e-2, rtol=5e-2), "mismatch vs. JAX reference (B=300)"

    print("KERNEL_OK")
</pallas_src>

<mosaic_0001>
module attributes {stable_mosaic.version = 11 : i64} {
  func.func @ebm_mlp_kernel(%arg0: i32, %arg1: memref<2x128xf32, #tpu.memory_space<vmem>>, %arg2: memref<128x2xf32, #tpu.memory_space<vmem>>, %arg3: memref<128x1xf32, #tpu.memory_space<vmem>>, %arg4: memref<128x128xbf16, #tpu.memory_space<vmem>>, %arg5: memref<128x1xf32, #tpu.memory_space<vmem>>, %arg6: memref<128x128xbf16, #tpu.memory_space<vmem>>, %arg7: memref<128x1xf32, #tpu.memory_space<vmem>>, %arg8: memref<128x1xf32, #tpu.memory_space<vmem>>, %arg9: memref<1x1xf32, #tpu.memory_space<smem>>, %arg10: memref<1x128xf32, #tpu.memory_space<vmem>>) attributes {dimension_semantics = [#tpu.dimension_semantics<parallel>], iteration_bounds = array<i64: 1>, scalar_prefetch = 0 : i64, scratch_operands = 0 : i64, tpu.core_type = #tpu.core_type<tc>, window_params = [{transform_indices = @transform_0, window_bounds = array<i64: 2, 128>}, {pipeline_mode = #tpu.pipeline_mode<synchronous>, transform_indices = @transform_1, window_bounds = array<i64: 128, 2>}, {pipeline_mode = #tpu.pipeline_mode<synchronous>, transform_indices = @transform_2, window_bounds = array<i64: 128, 1>}, {pipeline_mode = #tpu.pipeline_mode<synchronous>, transform_indices = @transform_3, window_bounds = array<i64: 128, 128>}, {pipeline_mode = #tpu.pipeline_mode<synchronous>, transform_indices = @transform_4, window_bounds = array<i64: 128, 1>}, {pipeline_mode = #tpu.pipeline_mode<synchronous>, transform_indices = @transform_5, window_bounds = array<i64: 128, 128>}, {pipeline_mode = #tpu.pipeline_mode<synchronous>, transform_indices = @transform_6, window_bounds = array<i64: 128, 1>}, {pipeline_mode = #tpu.pipeline_mode<synchronous>, transform_indices = @transform_7, window_bounds = array<i64: 128, 1>}, {transform_indices = @transform_8, window_bounds = array<i64: 1, 1>}, {transform_indices = @transform_9, window_bounds = array<i64: 1, 128>}]} {
    %c0 = arith.constant 0 : index
    %c0_0 = arith.constant 0 : index
    %0 = vector.load %arg1[%c0, %c0_0] : memref<2x128xf32, #tpu.memory_space<vmem>>, vector<2x128xf32>
    %c0_1 = arith.constant 0 : index
    %c0_2 = arith.constant 0 : index
    %1 = vector.load %arg2[%c0_1, %c0_2] : memref<128x2xf32, #tpu.memory_space<vmem>>, vector<128x1xf32>
    %2 = vector.extract_strided_slice %0 {offsets = [0, 0], sizes = [1, 128], strides = [1, 1]} : vector<2x128xf32> to vector<1x128xf32>
    %3 = vector.broadcast %1 : vector<128x1xf32> to vector<128x128xf32>
    %4 = vector.broadcast %2 : vector<1x128xf32> to vector<128x128xf32>
    %5 = arith.mulf %3, %4 : vector<128x128xf32>
    %c0_3 = arith.constant 0 : index
    %c1 = arith.constant 1 : index
    %6 = vector.load %arg2[%c0_3, %c1] : memref<128x2xf32, #tpu.memory_space<vmem>>, vector<128x1xf32>
    %7 = vector.extract_strided_slice %0 {offsets = [1, 0], sizes = [1, 128], strides = [1, 1]} : vector<2x128xf32> to vector<1x128xf32>
    %8 = vector.broadcast %6 : vector<128x1xf32> to vector<128x128xf32>
    %9 = vector.broadcast %7 : vector<1x128xf32> to vector<128x128xf32>
    %10 = arith.mulf %8, %9 : vector<128x128xf32>
    %11 = arith.addf %5, %10 : vector<128x128xf32>
    %c0_4 = arith.constant 0 : index
    %c0_5 = arith.constant 0 : index
    %12 = vector.load %arg3[%c0_4, %c0_5] : memref<128x1xf32, #tpu.memory_space<vmem>>, vector<128x1xf32>
    %13 = vector.broadcast %12 : vector<128x1xf32> to vector<128x128xf32>
    %14 = arith.addf %11, %13 : vector<128x128xf32>
    %cst = arith.constant 2.000000e-01 : f32
    %15 = vector.broadcast %cst : f32 to vector<128x128xf32>
    %16 = arith.mulf %15, %14 : vector<128x128xf32>
    %17 = arith.maximumf %14, %16 : vector<128x128xf32>
    %c0_6 = arith.constant 0 : index
    %c0_7 = arith.constant 0 : index
    %18 = vector.load %arg4[%c0_6, %c0_7] : memref<128x128xbf16, #tpu.memory_space<vmem>>, vector<128x128xbf16>
    %19 = arith.truncf %17 : vector<128x128xf32> to vector<128x128xbf16>
    %cst_8 = arith.constant dense<0.000000e+00> : vector<128x128xf32>
    %20 = tpu.matmul %18, %19, %cst_8 {dimension_numbers = #tpu.dot_dimension_numbers<[1], [0], [0], [1], [0, 0, 1, 1], [], []>} : vector<128x128xbf16>, vector<128x128xbf16>, vector<128x128xf32> -> vector<128x128xf32>
    %c0_9 = arith.constant 0 : index
    %c0_10 = arith.constant 0 : index
    %21 = vector.load %arg5[%c0_9, %c0_10] : memref<128x1xf32, #tpu.memory_space<vmem>>, vector<128x1xf32>
    %22 = vector.broadcast %21 : vector<128x1xf32> to vector<128x128xf32>
    %23 = arith.addf %20, %22 : vector<128x128xf32>
    %cst_11 = arith.constant 2.000000e-01 : f32
    %24 = vector.broadcast %cst_11 : f32 to vector<128x128xf32>
    %25 = arith.mulf %24, %23 : vector<128x128xf32>
    %26 = arith.maximumf %23, %25 : vector<128x128xf32>
    %c0_12 = arith.constant 0 : index
    %c0_13 = arith.constant 0 : index
    %27 = vector.load %arg6[%c0_12, %c0_13] : memref<128x128xbf16, #tpu.memory_space<vmem>>, vector<128x128xbf16>
    %28 = arith.truncf %26 : vector<128x128xf32> to vector<128x128xbf16>
    %cst_14 = arith.constant dense<0.000000e+00> : vector<128x128xf32>
    %29 = tpu.matmul %27, %28, %cst_14 {dimension_numbers = #tpu.dot_dimension_numbers<[1], [0], [0], [1], [0, 0, 1, 1], [], []>} : vector<128x128xbf16>, vector<128x128xbf16>, vector<128x128xf32> -> vector<128x128xf32>
    %c0_15 = arith.constant 0 : index
    %c0_16 = arith.constant 0 : index
    %30 = vector.load %arg7[%c0_15, %c0_16] : memref<128x1xf32, #tpu.memory_space<vmem>>, vector<128x1xf32>
    %31 = vector.broadcast %30 : vector<128x1xf32> to vector<128x128xf32>
    %32 = arith.addf %29, %31 : vector<128x128xf32>
    %cst_17 = arith.constant 2.000000e-01 : f32
    %33 = vector.broadcast %cst_17 : f32 to vector<128x128xf32>
    %34 = arith.mulf %33, %32 : vector<128x128xf32>
    %35 = arith.maximumf %32, %34 : vector<128x128xf32>
    %c0_18 = arith.constant 0 : index
    %c0_19 = arith.constant 0 : index
    %36 = vector.load %arg8[%c0_18, %c0_19] : memref<128x1xf32, #tpu.memory_space<vmem>>, vector<128x1xf32>
    %37 = vector.broadcast %36 : vector<128x1xf32> to vector<128x128xf32>
    %38 = arith.mulf %35, %37 : vector<128x128xf32>
    %cst_20 = arith.constant dense<0.000000e+00> : vector<128xf32>
    %39 = vector.multi_reduction <add>, %38, %cst_20 [0] : vector<128x128xf32> to vector<128xf32>
    %40 = vector.shape_cast %39 : vector<128xf32> to vector<1x128xf32>
    %c0_21 = arith.constant 0 : index
    %c0_22 = arith.constant 0 : index
    %41 = memref.load %arg9[%c0_21, %c0_22] : memref<1x1xf32, #tpu.memory_space<smem>>
    %42 = vector.broadcast %41 : f32 to vector<1x128xf32>
    %43 = arith.addf %40, %42 : vector<1x128xf32>
    %c0_23 = arith.constant 0 : index
    %c0_24 = arith.constant 0 : index
    %44 = vector.load %arg10[%c0_23, %c0_24] : memref<1x128xf32, #tpu.memory_space<vmem>>, vector<1x128xf32>
    tpu.vector_store %arg10[%c0_23, %c0_24], %43 {strides = array<i32>} : memref<1x128xf32, #tpu.memory_space<vmem>>, vector<1x128xf32>,
    return
  }
  func.func @transform_0(%arg0: i32) -> (i32, i32) {
    %c0_i32 = arith.constant 0 : i32
    %c0_i32_0 = arith.constant 0 : i32
    return %c0_i32, %arg0 : i32, i32
  }
  func.func @transform_1(%arg0: i32) -> (i32, i32) {
    %c0_i32 = arith.constant 0 : i32
    %c0_i32_0 = arith.constant 0 : i32
    %c0_i32_1 = arith.constant 0 : i32
    return %c0_i32, %c0_i32_0 : i32, i32
  }
  func.func @transform_2(%arg0: i32) -> (i32, i32) {
    %c0_i32 = arith.constant 0 : i32
    %c0_i32_0 = arith.constant 0 : i32
    %c0_i32_1 = arith.constant 0 : i32
    return %c0_i32, %c0_i32_0 : i32, i32
  }
  func.func @transform_3(%arg0: i32) -> (i32, i32) {
    %c0_i32 = arith.constant 0 : i32
    %c0_i32_0 = arith.constant 0 : i32
    %c0_i32_1 = arith.constant 0 : i32
    return %c0_i32, %c0_i32_0 : i32, i32
  }
  func.func @transform_4(%arg0: i32) -> (i32, i32) {
    %c0_i32 = arith.constant 0 : i32
    %c0_i32_0 = arith.constant 0 : i32
    %c0_i32_1 = arith.constant 0 : i32
    return %c0_i32, %c0_i32_0 : i32, i32
  }
  func.func @transform_5(%arg0: i32) -> (i32, i32) {
    %c0_i32 = arith.constant 0 : i32
    %c0_i32_0 = arith.constant 0 : i32
    %c0_i32_1 = arith.constant 0 : i32
    return %c0_i32, %c0_i32_0 : i32, i32
  }
  func.func @transform_6(%arg0: i32) -> (i32, i32) {
    %c0_i32 = arith.constant 0 : i32
    %c0_i32_0 = arith.constant 0 : i32
    %c0_i32_1 = arith.constant 0 : i32
    return %c0_i32, %c0_i32_0 : i32, i32
  }
  func.func @transform_7(%arg0: i32) -> (i32, i32) {
    %c0_i32 = arith.constant 0 : i32
    %c0_i32_0 = arith.constant 0 : i32
    %c0_i32_1 = arith.constant 0 : i32
    return %c0_i32, %c0_i32_0 : i32, i32
  }
  func.func @transform_8(%arg0: i32) -> (i32, i32) {
    %c0_i32 = arith.constant 0 : i32
    %c0_i32_0 = arith.constant 0 : i32
    %c0_i32_1 = arith.constant 0 : i32
    return %c0_i32, %c0_i32_0 : i32, i32
  }
  func.func @transform_9(%arg0: i32) -> (i32, i32) {
    %c0_i32 = arith.constant 0 : i32
    %c0_i32_0 = arith.constant 0 : i32
    return %c0_i32, %arg0 : i32, i32
  }
}

</mosaic_0001>

<bundles_post_ra>
// kernel: tpu_custom_call.1
= control target key start
LH: loop header
LB: loop body
LE: loop exit
PB: predicated region body
PF: predicated region fallthrough
CT: control target
= control target key end

     0   :  { %v1187_v3 = vmov 1   ;;  %v1188_v4 = vmov 0   ;;  %s1697_s0 = inlined_call_operand.vmem [shape: f32[2,128], index: 0, kind: input, shape index: {}]   ;;  %s1698_s1 = inlined_call_operand.vmem [shape: f32[128,2], index: 1, kind: input, shape index: {}]   ;;  %s1699_s2 = inlined_call_operand.vmem [shape: f32[128,1], index: 2, kind: input, shape index: {}]   ;;  %s1700_s3 = inlined_call_operand.vmem [shape: bf16[128,128], index: 3, kind: input, shape index: {}]   ;;  %s1701_s4 = inlined_call_operand.vmem [shape: f32[128,1], index: 4, kind: input, shape index: {}]   ;;  %s1702_s5 = inlined_call_operand.vmem [shape: bf16[128,128], index: 5, kind: input, shape index: {}]   ;;  %s1703_s6 = inlined_call_operand.vmem [shape: f32[128,1], index: 6, kind: input, shape index: {}]   ;;  %s1704_s7 = inlined_call_operand.vmem [shape: f32[128,1], index: 7, kind: input, shape index: {}]   ;;  %s1705_s8 = inlined_call_operand.<no memory space> [shape: f32[1,1], index: 8, kind: input, shape index: {}]   ;;  %s1706_s9 = inlined_call_operand.hbm [shape: f32[1,128], index: 9, kind: output, shape index: {}]  }
   0x1   :  { %v48_v0 = vld [vmem:[%s1698_s1 + $0x68] sm:$0xff]  ;;  %v1246_v1 = vld [vmem:[%s1698_s1 + $0x20] sm:$0xff]  ;;  %v1251_v2 = vld [vmem:[%s1698_s1 + $0x10] sm:$0xff]  ;;  %1144 = vset.pattern.permute.xlu0 %v1187_v3  ;;  %1140 = vset.pattern.permute.xlu2 %v1188_v4 }
   0x2   :  { %1139 = vset.pattern.permute.xlu1 %v1188_v4  ;;  %201 = vperm.xlu0 %1144, %v48_v0  }
   0x3   :  { %73 = vperm.xlu2 %1140, %v1246_v1   ;;  %63 = vperm.xlu1 %1139, %v1251_v2  }
   0x4   :  { %15 = vsyncpa [#allocation4], 0  ;;  %v45_v5 = vld [vmem:[%s1698_s1 + $0x50] sm:$0xff]  ;;  %v1264_v6 = vld [vmem:[%s1698_s1 + $0x28] sm:$0xff]  ;;  %s1189_s11 = smov [#allocation3]  }
   0x5   :  { %v1269_v7 = vld [vmem:[%s1698_s1 + $0x18] sm:$0xff]  ;;  %v49_v9 = vld [vmem:[%s1698_s1 + $0x70] sm:$0xff]  ;;  %v1286_v11 = vld [vmem:[%s1698_s1] sm:$0xff] }
   0x6   :  { %v42_v8 = vld [vmem:[%s1698_s1 + $0x38] sm:$0xff]  ;;  %v47_v12 = vld [vmem:[%s1698_s1 + $0x60] sm:$0xff]  ;;  %v1297_v13 = vld [vmem:[%s1698_s1 + $0x8] sm:$0xff] }
   0x7   :  { %v50_v10 = vld [vmem:[%s1698_s1 + $0x78] sm:$0xff]  ;;  %v41_v14 = vld [vmem:[%s1698_s1 + $0x30] sm:$0xff]  ;;  %v257_v18 = vld [vmem:[%s1699_s2 + $0x60] sm:$0xff] }
   0x8   :  { %v260_v15 = vld [vmem:[%s1699_s2 + $0x78] sm:$0xff]  ;;  %v259_v16 = vld [vmem:[%s1699_s2 + $0x70] sm:$0xff]  ;;  %v258_v19 = vld [vmem:[%s1699_s2 + $0x68] sm:$0xff] }
   0x9   :  { %v46_v17 = vld [vmem:[%s1698_s1 + $0x58] sm:$0xff]  ;;  %v44_v20 = vld [vmem:[%s1698_s1 + $0x48] sm:$0xff]  ;;  %v43_v21 = vld [vmem:[%s1698_s1 + $0x40] sm:$0xff] }
   0xa   :  { %189 = vperm.xlu0 %1144, %v45_v5   ;;  %v255_v22 = vld [vmem:[%s1699_s2 + $0x50] sm:$0xff]  ;;  %v256_v24 = vld [vmem:[%s1699_s2 + $0x58] sm:$0xff]  ;;  %v250_v25 = vld [vmem:[%s1699_s2 + $0x28] sm:$0xff] }
   0xb   :  { %78 = vperm.xlu2 %1140, %v1264_v6   ;;  %68 = vperm.xlu1 %1139, %v1269_v7   ;;  %v251_v23 = vld [vmem:[%s1699_s2 + $0x30] sm:$0xff]  ;;  %v254_v26 = vld [vmem:[%s1699_s2 + $0x48] sm:$0xff]  ;;  %v253_v28 = vld [vmem:[%s1699_s2 + $0x40] sm:$0xff] }
   0xc   :  { %v247_v29 = vld [vmem:[%s1699_s2 + $0x10] sm:$0xff]  ;;  %v246_v31 = vld [vmem:[%s1699_s2 + $0x8] sm:$0xff]  ;;  %v252_v33 = vld [vmem:[%s1699_s2 + $0x38] sm:$0xff] }
   0xd   :  { %v425_v34 = vld [vmem:[%s1701_s4 + $0x60] sm:$0xff]  ;;  %v424_v39 = vld [vmem:[%s1701_s4 + $0x58] sm:$0xff]  ;;  %v419_v45 = vld [vmem:[%s1701_s4 + $0x30] sm:$0xff] }
   0xe   :  { %v249_v38 = vld [vmem:[%s1699_s2 + $0x20] sm:$0xff]  ;;  %v418_v54 = vld [vmem:[%s1701_s4 + $0x28] sm:$0xff]  ;;  %v248_v55 = vld [vmem:[%s1699_s2 + $0x18] sm:$0xff] }
   0xf   :  { %v34_v43 = vld [vmem:[%s1697_s0] sm:$0x3]  ;;  %v428_v58 = vld [vmem:[%s1701_s4 + $0x78] sm:$0xff]  ;;  %v427_v61 = vld [vmem:[%s1701_s4 + $0x70] sm:$0xff]  ;;  %s1029_s0 = sshll.u32 %s1189_s11, 4  ;;  %s1030_s0 = int_to_ptr.vmem [resolvable:$true] %s1029_s0 }
  0x10   :  { %v1398_v44 = vperm.slane %v34_v43, 1  ;;  %v1405_v46 = vperm.slane %v34_v43, 0  ;;  %v245_v51 = vld [vmem:[%s1699_s2] sm:$0xff] }
  0x11   :  { %v413_v59 = vld [vmem:[%s1701_s4] sm:$0xff] }
  0x12   :  { %177 = vperm.xlu0 %1144, %v42_v8  }
  0x13   :  { %123 = vperm.xlu2 %1140, %v49_v9   ;;  %88 = vperm.xlu1 %1139, %v42_v8   ;;  %v666_v8 = vld [vmem:[%s1703_s6 + $0x20] sm:$0xff] }
  0x1a   :  { %1151 = vset.pattern.permute.xlu0 %v1188_v4 }
  0x1b   :  { %1142 = vset.pattern.permute.xlu2 %v1187_v3  ;;  %1141 = vset.pattern.permute.xlu1 %v1187_v3 }
  0x1c   :  { %209 = vperm.xlu2 %1142, %v50_v10   ;;  %205 = vperm.xlu1 %1141, %v49_v9   ;;  %v421_v9 = vld [vmem:[%s1701_s4 + $0x40] sm:$0xff] }
  0x1d   :  { %53 = vperm.xlu0 %1151, %v1286_v11  }
  0x24   :  { %197 = vperm.xlu2 %1142, %v47_v12   ;;  %1143 = vset.pattern.permute.xlu1 %v1188_v4 }
  0x25   :  { %58 = vperm.xlu0 %1151, %v1297_v13   ;;  %118 = vperm.xlu1 %1143, %v48_v0   ;;  %v423_v0 = vld [vmem:[%s1701_s4 + $0x50] sm:$0xff] }
  0x2c   :  { %1145 = vset.pattern.permute.xlu2 %v1188_v4 }
  0x2d   :  { %83 = vperm.xlu0 %1151, %v41_v14   ;;  %338 = vperm.xlu2 %1145, %v260_v15  }
  0x2e   :  { %333 = vperm.xlu1 %1143, %v259_v16  }
  0x35   :  { %128 = vperm.xlu0 %1151, %v50_v10   ;;  %108 = vperm.xlu2 %1145, %v46_v17  }
  0x36   :  { %103 = vperm.xlu1 %1143, %v45_v5  }
  0x3d   :  { %113 = vperm.xlu0 %1151, %v47_v12   ;;  %323 = vperm.xlu2 %1145, %v257_v18   ;;  %v417_v18 = vld [vmem:[%s1701_s4 + $0x20] sm:$0xff] }
  0x3e   :  { %1146 = vset.pattern.permute.xlu1 %v1187_v3 }
  0x3f   :  { %193 = vperm.xlu1 %1146, %v46_v17  }
  0x45   :  { %328 = vperm.xlu0 %1151, %v258_v19   ;;  %98 = vperm.xlu2 %1145, %v44_v20  }
  0x47   :  { %1147 = vset.pattern.permute.xlu1 %v1188_v4 }
  0x48   :  { %93 = vperm.xlu1 %1147, %v43_v21  }
  0x4d   :  { %313 = vperm.xlu0 %1151, %v255_v22   ;;  %1149 = vset.pattern.permute.xlu2 %v1187_v3 }
  0x4e   :  { %185 = vperm.xlu2 %1149, %v44_v20   ;;  %v669_v20 = vld [vmem:[%s1703_s6 + $0x38] sm:$0xff] }
  0x50   :  { %1148 = vset.pattern.permute.xlu1 %v1187_v3 }
  0x51   :  { %181 = vperm.xlu1 %1148, %v43_v21   ;;  %v420_v21 = vld [vmem:[%s1701_s4 + $0x38] sm:$0xff] }
  0x55   :  { %293 = vperm.xlu0 %1151, %v251_v23  }
  0x56   :  { %173 = vperm.xlu2 %1149, %v41_v14  }
  0x59   :  { %1150 = vset.pattern.permute.xlu1 %v1188_v4 }
  0x5a   :  { %318 = vperm.xlu1 %1150, %v256_v24  }
  0x5d   :  { %288 = vperm.xlu0 %1151, %v250_v25   ;;  %v1346_v27 = vpop.permute.xlu2 %73 }
  0x5e   :  { %1152 = vset.pattern.permute.xlu2 %v1188_v4 }
  0x5f   :  { %308 = vperm.xlu2 %1152, %v254_v26  }
  0x62   :  { %303 = vperm.xlu1 %1150, %v253_v28  }
  0x65   :  { %273 = vperm.xlu0 %1151, %v247_v29   ;;  %v1355_v30 = vpop.permute.xlu2 %78 }
  0x67   :  { %1154 = vset.pattern.permute.xlu2 %v1187_v3 }
  0x68   :  { %169 = vperm.xlu2 %1154, %v1264_v6   ;;  %v422_v6 = vld [vmem:[%s1701_s4 + $0x48] sm:$0xff] }
  0x6a   :  { %1153 = vset.pattern.permute.xlu1 %v1187_v3 }
  0x6b   :  { %165 = vperm.xlu1 %1153, %v1246_v1   ;;  %v663_v1 = vld [vmem:[%s1703_s6 + $0x8] sm:$0xff] }
  0x6d   :  { %268 = vperm.xlu0 %1151, %v246_v31   ;;  %v1364_v32 = vpop.permute.xlu2 %123  ;;  %v416_v31 = vld [vmem:[%s1701_s4 + $0x18] sm:$0xff] }
  0x6e   :  { %v146_v10 = vmul.f32 %v1405_v46, %v1364_v32 }
  0x70   :  { %157 = vperm.xlu2 %1154, %v1251_v2   ;;  %v426_v2 = vld [vmem:[%s1701_s4 + $0x68] sm:$0xff] }
  0x73   :  { %1155 = vset.pattern.permute.xlu1 %v1188_v4 }
  0x74   :  { %298 = vperm.xlu1 %1155, %v252_v33   ;;  %v1374_v35 = vpop.permute.xlu0 %201 }
  0x75   :  { %491 = vperm.xlu0 %1151, %v425_v34   ;;  %v1376_v36 = vpop.permute.xlu1 %63 }
  0x76   :  { %v1378_v37 = vpop.permute.xlu2 %209 }
  0x77   :  { %v228_v14 = vmul.f32 %v1398_v44, %v1378_v37  ;;  %v226_v37 = vmul.f32 %v1398_v44, %v1374_v35 }
  0x78   :  { %1157 = vset.pattern.permute.xlu2 %v1188_v4 }
  0x79   :  { %283 = vperm.xlu2 %1157, %v249_v38  }
  0x7c   :  { %1156 = vset.pattern.permute.xlu1 %v1187_v3  ;;  %v1388_v40 = vpop.permute.xlu0 %189 }
  0x7d   :  { %161 = vperm.xlu1 %1156, %v1269_v7   ;;  %486 = vperm.xlu0 %1151, %v424_v39   ;;  %v1391_v41 = vpop.permute.xlu1 %68 }
  0x7e   :  { %v1393_v42 = vpop.permute.xlu2 %197 }
  0x7f   :  { %v225_v26 = vmul.f32 %v1398_v44, %v1393_v42  ;;  %v672_v42 = vld [vmem:[%s1703_s6 + $0x50] sm:$0xff] }
  0x81   :  { %1158 = vset.pattern.permute.xlu2 %v1187_v3 }
  0x82   :  { %153 = vperm.xlu2 %1158, %v1297_v13  }
  0x84   :  { %v178_v47 = vpop.permute.xlu0 %177 }
  0x85   :  { %149 = vperm.xlu1 %1156, %v1286_v11   ;;  %461 = vperm.xlu0 %1151, %v419_v45   ;;  %v220_v48 = vmul.f32 %v1398_v44, %v178_v47  ;;  %v89_v49 = vpop.permute.xlu1 %88  ;;  %v415_v45 = vld [vmem:[%s1701_s4 + $0x10] sm:$0xff] }
  0x86   :  { %v139_v50 = vmul.f32 %v1405_v46, %v89_v49 }
  0x87   :  { %v339_v53 = vpop.permute.xlu2 %338 }
  0x88   :  { %v1413_v52 = vadd.f32 %v220_v48, %v139_v50  ;;  %v662_v50 = vld [vmem:[%s1703_s6] sm:$0xff] }
  0x8a   :  { %1160 = vset.pattern.permute.xlu2 %v1188_v4 }
  0x8b   :  { %263 = vperm.xlu2 %1160, %v245_v51  }
  0x8d   :  { %1159 = vset.pattern.permute.xlu1 %v1188_v4  ;;  %456 = vperm.xlu0 %1151, %v418_v54  }
  0x8e   :  { %278 = vperm.xlu1 %1159, %v248_v55   ;;  %v206_v56 = vpop.permute.xlu1 %205  ;;  %v675_v55 = vld [vmem:[%s1703_s6 + $0x68] sm:$0xff] }
  0x8f   :  { %v1423_v57 = vpop.permute.xlu0 %53  ;;  %v1431_v60 = vpop.permute.xlu2 %108  ;;  %v227_v7 = vmul.f32 %v1398_v44, %v206_v56 }
  0x91   :  { %v243_v11 = vadd.f32 %v227_v7, %v146_v10 }
  0x93   :  { %506 = vperm.xlu2 %1160, %v428_v58   ;;  %v414_v58 = vld [vmem:[%s1701_s4 + $0x8] sm:$0xff] }
  0x95   :  { %431 = vperm.xlu0 %1151, %v413_v59  }
  0x96   :  { %501 = vperm.xlu1 %1159, %v427_v61  }
  0x97   :  { %v1436_v62 = vpop.permute.xlu0 %58  ;;  %v119_v63 = vpop.permute.xlu1 %118 }
  0x98   :  { %v324_v3 = vpop.permute.xlu2 %323  ;;  %v145_v38 = vmul.f32 %v1405_v46, %v119_v63 }
  0x9a   :  { %v242_v48 = vadd.f32 %v226_v37, %v145_v38  ;;  %v670_v37 = vld [vmem:[%s1703_s6 + $0x40] sm:$0xff] }
  0x9b   :  { %481 = vperm.xlu2 %1160, %v423_v0   ;;  %v665_v0 = vld [vmem:[%s1703_s6 + $0x18] sm:$0xff] }
  0x9d   :  { %685 = vperm.xlu0 %1151, %v663_v1   ;;  %v887_v1 = vld [vmem:[%s1704_s7] sm:$0xff] }
  0x9e   :  { %496 = vperm.xlu1 %1159, %v426_v2  }
  0x9f   :  { %v1447_v4 = vpop.permute.xlu0 %83 }
  0xa0   :  { %v334_v5 = vpop.permute.xlu1 %333  ;;  %v1461_v12 = vpop.permute.xlu2 %98 }
  0xa1   :  { %v355_v15 = vadd.f32 %v334_v5, %v243_v11  ;;  %v664_v5 = vld [vmem:[%s1703_s6 + $0x10] sm:$0xff] }
  0xa2   :  { %v668_v11 = vld [vmem:[%s1703_s6 + $0x30] sm:$0xff] }
  0xa3   :  { %476 = vperm.xlu2 %1160, %v422_v6   ;;  %v371_v22 = vmul.f32 0.2, %v355_v15  ;;  %v223_v6 = vmul.f32 %v1398_v44, %v1388_v40 }
  0xa5   :  { %700 = vperm.xlu0 %1151, %v666_v8   ;;  %v387_v28 = vmax.f32 %v355_v15, %v371_v22  ;;  %v890_v15 = vld [vmem:[%s1704_s7 + $0x18] sm:$0xff] }
  0xa6   :  { %471 = vperm.xlu1 %1159, %v421_v9  }
  0xa7   :  { %v129_v13 = vpop.permute.xlu0 %128 }
  0xa8   :  { %v147_v16 = vmul.f32 %v1405_v46, %v129_v13  ;;  %v104_v17 = vpop.permute.xlu1 %103  ;;  %v186_v33 = vpop.permute.xlu2 %185  ;;  %v143_v13 = vmul.f32 %v1405_v46, %v1431_v60 }
  0xa9   :  { %v142_v2 = vmul.f32 %v1405_v46, %v104_v17  ;;  %v222_v40 = vmul.f32 %v1398_v44, %v186_v33  ;;  %v667_v17 = vld [vmem:[%s1703_s6 + $0x28] sm:$0xff] }
  0xaa   :  { %v244_v19 = vadd.f32 %v228_v14, %v147_v16 }
  0xab   :  { %451 = vperm.xlu2 %1160, %v417_v18   ;;  %v239_v10 = vadd.f32 %v223_v6, %v142_v2 }
  0xac   :  { %v356_v23 = vadd.f32 %v339_v53, %v244_v19  ;;  %v141_v19 = vmul.f32 %v1405_v46, %v1461_v12  ;;  %v893_v12 = vld [vmem:[%s1704_s7 + $0x30] sm:$0xff] }
  0xad   :  { %715 = vperm.xlu0 %1151, %v669_v20  }
  0xae   :  { %466 = vperm.xlu1 %1159, %v420_v21   ;;  %v372_v24 = vmul.f32 0.2, %v356_v23  ;;  %v238_v60 = vadd.f32 %v222_v40, %v141_v19  ;;  %v889_v40 = vld [vmem:[%s1704_s7 + $0x10] sm:$0xff] }
  0xaf   :  { %v114_v25 = vpop.permute.xlu0 %113 }
  0xb0   :  { %v144_v29 = vmul.f32 %v1405_v46, %v114_v25  ;;  %v388_v32 = vmax.f32 %v356_v23, %v372_v24  ;;  %v1496_v56 = vpop.permute.xlu2 %173  ;;  %v671_v25 = vld [vmem:[%s1703_s6 + $0x48] sm:$0xff] }
  0xb1   :  { %v194_v34 = vpop.permute.xlu1 %193 }
  0xb2   :  { %v241_v39 = vadd.f32 %v225_v26, %v144_v29  ;;  %v412_v43 = vpack.c.bf16 %v388_v32, %v387_v28  ;;  %v224_v9 = vmul.f32 %v1398_v44, %v194_v34 }
  0xb3   :  { %446 = vperm.xlu2 %1160, %v416_v31  }
  0xb4   :  { %v353_v47 = vadd.f32 %v324_v3, %v241_v39  ;;  %557 = vmatpush.bf16.msra.mxu0 %v412_v43  ;;  %1120 = vmatpush.bf16.msra.mxu2 %v412_v43  ;;  %v240_v16 = vadd.f32 %v224_v9, %v143_v13 }
  0xb5   :  { %730 = vperm.xlu0 %1151, %v672_v42  }
  0xb6   :  { %441 = vperm.xlu1 %1159, %v415_v45   ;;  %v369_v51 = vmul.f32 0.2, %v353_v47 }
  0xb7   :  { %v329_v35 = vpop.permute.xlu0 %328 }
  0xb8   :  { %v354_v49 = vadd.f32 %v329_v35, %v242_v48  ;;  %v385_v61 = vmax.f32 %v353_v47, %v369_v51  ;;  %v674_v47 = vld [vmem:[%s1703_s6 + $0x60] sm:$0xff]  ;;  %v896_v51 = vld [vmem:[%s1704_s7 + $0x48] sm:$0xff] }
  0xb9   :  { %v309_v7 = vpop.permute.xlu2 %308 }
  0xba   :  { %v370_v53 = vmul.f32 0.2, %v354_v49  ;;  %v94_v54 = vpop.permute.xlu1 %93  ;;  %v350_v26 = vadd.f32 %v309_v7, %v238_v60  ;;  %v899_v7 = vld [vmem:[%s1704_s7 + $0x60] sm:$0xff] }
  0xbb   :  { %680 = vperm.xlu2 %1160, %v662_v50   ;;  %v140_v28 = vmul.f32 %v1405_v46, %v94_v54  ;;  %v137_v50 = vmul.f32 %v1405_v46, %v1355_v30  ;;  %v136_v30 = vmul.f32 %v1405_v46, %v1346_v27  ;;  %v676_v27 = vld [vmem:[%s1703_s6 + $0x70] sm:$0xff] }
  0xbc   :  { %v386_v59 = vmax.f32 %v354_v49, %v370_v53  ;;  %v366_v39 = vmul.f32 0.2, %v350_v26 }
  0xbd   :  { %745 = vperm.xlu0 %1151, %v675_v55   ;;  %v673_v55 = vld [vmem:[%s1703_s6 + $0x58] sm:$0xff] }
  0xbe   :  { %436 = vperm.xlu1 %1159, %v414_v58   ;;  %v411_v63 = vpack.c.bf16 %v386_v59, %v385_v61  ;;  %v382_v48 = vmax.f32 %v350_v26, %v366_v39  ;;  %v138_v59 = vmul.f32 %v1405_v46, %v1447_v4  ;;  %v219_v61 = vmul.f32 %v1398_v44, %v1496_v56 }
  0xbf   :  { %v314_v8 = vpop.permute.xlu0 %313  ;;  %v133_v26 = vmul.f32 %v1405_v46, %v1436_v62  ;;  %v134_v62 = vmul.f32 %v1405_v46, %v1376_v36 }
  0xc0   :  { %558 = vmatpush.bf16.msra.mxu0 %v411_v63  ;;  %1121 = vmatpush.bf16.msra.mxu2 %v411_v63  ;;  %v351_v14 = vadd.f32 %v314_v8, %v239_v10  ;;  %v235_v4 = vadd.f32 %v219_v61, %v138_v59 }
  0xc2   :  { %v367_v20 = vmul.f32 0.2, %v351_v14  ;;  %v170_v22 = vpop.permute.xlu2 %169 }
  0xc3   :  { %v182_v3 = vpop.permute.xlu1 %181  ;;  %695 = vperm.xlu2 %1160, %v665_v0   ;;  %v218_v45 = vmul.f32 %v1398_v44, %v170_v22 }
  0xc4   :  { %v221_v23 = vmul.f32 %v1398_v44, %v182_v3  ;;  %v383_v29 = vmax.f32 %v351_v14, %v367_v20  ;;  %v677_v3 = vld [vmem:[%s1703_s6 + $0x78] sm:$0xff]  ;;  %s1031_s6 = sshll.u32 %s1706_s9, 4  ;;  %s1032_s6 = int_to_ptr.hbm [resolvable:$true] %s1031_s6 }
  0xc5   :  { %905 = vperm.xlu0 %1151, %v887_v1   ;;  %v234_v58 = vadd.f32 %v218_v45, %v137_v50 }
  0xc6   :  { %690 = vperm.xlu1 %1159, %v664_v5   ;;  %v237_v33 = vadd.f32 %v221_v23, %v140_v28  ;;  %v891_v28 = vld [vmem:[%s1704_s7 + $0x20] sm:$0xff] }
  0xc7   :  { %v294_v31 = vpop.permute.xlu0 %293 }
  0xc8   :  { %v347_v8 = vadd.f32 %v294_v31, %v235_v4  ;;  %v1105_v4 = vld [vmem:[%s1700_s3 + $0x8] sm:$0xff] }
  0xca   :  { %v158_v35 = vpop.permute.xlu2 %157  ;;  %v363_v14 = vmul.f32 0.2, %v347_v8 }
  0xcb   :  { %710 = vperm.xlu2 %1160, %v668_v11   ;;  %v215_v31 = vmul.f32 %v1398_v44, %v158_v35  ;;  %v135_v35 = vmul.f32 %v1405_v46, %v1391_v41 }
  0xcc   :  { %v319_v18 = vpop.permute.xlu1 %318  ;;  %v379_v19 = vmax.f32 %v347_v8, %v363_v14  ;;  %v1111_v8 = vld [vmem:[%s1700_s3 + $0x38] sm:$0xff] }
  0xcd   :  { %v352_v21 = vadd.f32 %v319_v18, %v240_v16  ;;  %920 = vperm.xlu0 %1151, %v890_v15   ;;  %v902_v18 = vld [vmem:[%s1704_s7 + $0x78] sm:$0xff] }
  0xce   :  { %705 = vperm.xlu1 %1159, %v667_v17  }
  0xcf   :  { %v368_v24 = vmul.f32 0.2, %v352_v21  ;;  %v289_v53 = vpop.permute.xlu0 %288 }
  0xd0   :  { %v346_v0 = vadd.f32 %v289_v53, %v234_v58 }
  0xd1   :  { %v384_v32 = vmax.f32 %v352_v21, %v368_v24  ;;  %v888_v21 = vld [vmem:[%s1704_s7 + $0x8] sm:$0xff] }
  0xd2   :  { %v362_v6 = vmul.f32 0.2, %v346_v0 }
  0xd3   :  { %725 = vperm.xlu2 %1160, %v671_v25   ;;  %v410_v34 = vpack.c.bf16 %v384_v32, %v383_v29  ;;  %v284_v5 = vpop.permute.xlu2 %283  ;;  %v892_v25 = vld [vmem:[%s1704_s7 + $0x28] sm:$0xff] }
  0xd4   :  { %v304_v38 = vpop.permute.xlu1 %303  ;;  %v378_v10 = vmax.f32 %v346_v0, %v362_v6  ;;  %v901_v0 = vld [vmem:[%s1704_s7 + $0x70] sm:$0xff] }
  0xd5   :  { %v349_v43 = vadd.f32 %v304_v38, %v237_v33  ;;  %935 = vperm.xlu0 %1151, %v893_v12   ;;  %559 = vmatpush.bf16.msra.mxu0 %v410_v34  ;;  %v132_v33 = vmul.f32 %v1405_v46, %v1423_v57  ;;  %v895_v38 = vld [vmem:[%s1704_s7 + $0x40] sm:$0xff]  ;;  %v1106_v6 = vld [vmem:[%s1700_s3 + $0x10] sm:$0xff] }
  0xd6   :  { %1122 = vmatpush.bf16.msra.mxu2 %v410_v34  ;;  %720 = vperm.xlu1 %1159, %v670_v37  }
  0xd7   :  { %v365_v42 = vmul.f32 0.2, %v349_v43  ;;  %v274_v60 = vpop.permute.xlu0 %273 }
  0xd9   :  { %v381_v49 = vmax.f32 %v349_v43, %v365_v42  ;;  %v231_v43 = vadd.f32 %v215_v31, %v134_v62 }
  0xdb   :  { %740 = vperm.xlu2 %1160, %v674_v47   ;;  %v409_v54 = vpack.c.bf16 %v382_v48, %v381_v49  ;;  %v894_v47 = vld [vmem:[%s1704_s7 + $0x38] sm:$0xff]  ;;  %v343_v36 = vadd.f32 %v274_v60, %v231_v43 }
  0xdc   :  { %v154_v22 = vpop.permute.xlu2 %153 }
  0xdd   :  { %v166_v63 = vpop.permute.xlu1 %165  ;;  %950 = vperm.xlu0 %1151, %v896_v51   ;;  %560 = vmatpush.bf16.msra.mxu0 %v409_v54  ;;  %v214_v24 = vmul.f32 %v1398_v44, %v154_v22 }
  0xde   :  { %v217_v1 = vmul.f32 %v1398_v44, %v166_v63  ;;  %1123 = vmatpush.bf16.msra.mxu2 %v409_v54  ;;  %735 = vperm.xlu1 %1159, %v673_v55   ;;  %v359_v55 = vmul.f32 0.2, %v343_v36  ;;  %v897_v63 = vld [vmem:[%s1704_s7 + $0x50] sm:$0xff] }
  0xdf   :  { %v230_v29 = vadd.f32 %v214_v24, %v133_v26  ;;  %v269_v32 = vpop.permute.xlu0 %268 }
  0xe0   :  { %v233_v2 = vadd.f32 %v217_v1, %v136_v30  ;;  %v375_v41 = vmax.f32 %v343_v36, %v359_v55  ;;  %v900_v1 = vld [vmem:[%s1704_s7 + $0x68] sm:$0xff] }
  0xe1   :  { %v342_v34 = vadd.f32 %v269_v32, %v230_v29 }
  0xe2   :  { %v345_v56 = vadd.f32 %v284_v5, %v233_v2  ;;  %v1104_v2 = vld [vmem:[%s1700_s3] sm:$0xff]  ;;  %v1109_v5 = vld [vmem:[%s1700_s3 + $0x28] sm:$0xff] }
  0xe3   :  { %755 = vperm.xlu2 %1160, %v677_v3   ;;  %v358_v57 = vmul.f32 0.2, %v342_v34  ;;  %v1108_v3 = vld [vmem:[%s1700_s3 + $0x20] sm:$0xff] }
  0xe4   :  { %v361_v9 = vmul.f32 0.2, %v345_v56 }
  0xe5   :  { %965 = vperm.xlu0 %1151, %v899_v7   ;;  %v264_v42 = vpop.permute.xlu2 %263  ;;  %v374_v51 = vmax.f32 %v342_v34, %v358_v57  ;;  %v1107_v7 = vld [vmem:[%s1700_s3 + $0x18] sm:$0xff] }
  0xe6   :  { %v299_v11 = vpop.permute.xlu1 %298  ;;  %750 = vperm.xlu1 %1159, %v676_v27   ;;  %v377_v13 = vmax.f32 %v345_v56, %v361_v9  ;;  %v1110_v56 = vld [vmem:[%s1700_s3 + $0x30] sm:$0xff] }
  0xe7   :  { %v348_v15 = vadd.f32 %v299_v11, %v1413_v52 }
  0xe8   :  { %v407_v16 = vpack.c.bf16 %v378_v10, %v377_v13 }
  0xe9   :  { %v364_v17 = vmul.f32 0.2, %v348_v15 }
  0xeb   :  { %v380_v20 = vmax.f32 %v348_v15, %v364_v17  ;;  %915 = vperm.xlu2 %1160, %v889_v40  }
  0xed   :  { %980 = vperm.xlu0 %1151, %v902_v18   ;;  %v408_v52 = vpack.c.bf16 %v380_v20, %v379_v19  ;;  %v507_v18 = vpop.permute.xlu2 %506 }
  0xee   :  { %910 = vperm.xlu1 %1159, %v888_v21   ;;  %v492_v21 = vpop.permute.xlu0 %491 }
  0xef   :  { %v162_v23 = vpop.permute.xlu1 %161  ;;  %561 = vmatpush.bf16.msra.mxu0 %v408_v52  ;;  %1124 = vmatpush.bf16.msra.mxu2 %v408_v52 }
  0xf0   :  { %v216_v45 = vmul.f32 %v1398_v44, %v162_v23 }
  0xf2   :  { %v232_v50 = vadd.f32 %v216_v45, %v135_v35 }
  0xf3   :  { %562 = vmatpush.bf16.msra.mxu0 %v407_v16  ;;  %1125 = vmatpush.bf16.msra.mxu2 %v407_v16 }
  0xf4   :  { %930 = vperm.xlu2 %1160, %v892_v25  }
  0xf5   :  { %v482_v22 = vpop.permute.xlu2 %481 }
  0xf6   :  { %925 = vperm.xlu1 %1159, %v891_v28   ;;  %v487_v25 = vpop.permute.xlu0 %486 }
  0xf7   :  { %v150_v12 = vpop.permute.xlu1 %149 }
  0xf8   :  { %v213_v37 = vmul.f32 %v1398_v44, %v150_v12  ;;  %v898_v44 = vld [vmem:[%s1704_s7 + $0x58] sm:$0xff] }
  0xfa   :  { %v229_v39 = vadd.f32 %v213_v37, %v132_v33 }
  0xfc   :  { %v341_v48 = vadd.f32 %v264_v42, %v229_v39  ;;  %945 = vperm.xlu2 %1160, %v895_v38  }
  0xfd   :  { %v477_v28 = vpop.permute.xlu2 %476 }
  0xfe   :  { %940 = vperm.xlu1 %1159, %v894_v47   ;;  %v357_v49 = vmul.f32 0.2, %v341_v48  ;;  %v462_v43 = vpop.permute.xlu0 %461 }
 0x100   :  { %v279_v53 = vpop.permute.xlu1 %278  ;;  %v373_v54 = vmax.f32 %v341_v48, %v357_v49 }
 0x101   :  { %v344_v58 = vadd.f32 %v279_v53, %v232_v50 }
 0x102   :  { %v405_v59 = vpack.c.bf16 %v374_v51, %v373_v54 }
 0x103   :  { %v360_v61 = vmul.f32 0.2, %v344_v58 }
 0x104   :  { %960 = vperm.xlu2 %1160, %v898_v44  }
 0x105   :  { %v376_v46 = vmax.f32 %v344_v58, %v360_v61  ;;  %v452_v50 = vpop.permute.xlu2 %451 }
 0x106   :  { %955 = vperm.xlu1 %1159, %v897_v63  }
 0x107   :  { %v406_v30 = vpack.c.bf16 %v376_v46, %v375_v41 }
 0x108   :  { %v502_v16 = vpop.permute.xlu1 %501 }
 0x109   :  { %563 = vmatpush.bf16.msra.mxu0 %v406_v30  ;;  %1126 = vmatpush.bf16.msra.mxu2 %v406_v30 }
 0x10c   :  { %975 = vperm.xlu2 %1160, %v901_v0   ;;  %v457_v0 = vpop.permute.xlu0 %456 }
 0x10d   :  { %564 = vmatpush.bf16.msra.mxu0 %v405_v59  ;;  %1127 = vmatpush.bf16.msra.mxu2 %v405_v59 }
 0x10e   :  { %970 = vperm.xlu1 %1159, %v900_v1  }
 0x110   :  { %565 = vmatmul.bf16.vlgmr.msra.gmra.mxu0 %v1104_v2  ;;  %585 = vmatmul.bf16.vlgmr.msra.gmra.mxu2 %v1108_v3  ;;  %v497_v20 = vpop.permute.xlu1 %496 }
 0x118   :  { %v472_v23 = vpop.permute.xlu1 %471 }
 0x120   :  { %570 = vmatmul.bf16.gmra.mxu0 %v1105_v4  ;;  %590 = vmatmul.bf16.gmra.mxu2 %v1109_v5  ;;  %v467_v37 = vpop.permute.xlu1 %466 }
 0x128   :  { %v442_v63 = vpop.permute.xlu1 %441 }
 0x130   :  { %575 = vmatmul.bf16.gmra.mxu0 %v1106_v6  ;;  %595 = vmatmul.bf16.gmra.mxu2 %v1110_v56 }
 0x140   :  { %580 = vmatmul.bf16.gmra.mxu0 %v1107_v7  ;;  %600 = vmatmul.bf16.gmra.mxu2 %v1111_v8  ;;  %v447_v7 = vpop.permute.xlu2 %446 }
 0x18d   :  { %v1637_v27 = vpop.f32.mrf.mxu0 }
 0x193   :  { %v586_v9 = vpop.f32.mrf.mxu2 }
 0x194   :  { %v587_v53 = vadd.f32 %v586_v9, %v472_v23 }
 0x195   :  { %v1639_v10 = vpop.f32.mrf.mxu0 }
 0x196   :  { %v614_v41 = vmul.f32 0.2, %v587_v53 }
 0x198   :  { %v630_v5 = vmax.f32 %v587_v53, %v614_v41 }
 0x19b   :  { %v588_v11 = vpop.f32.mrf.mxu2 }
 0x19c   :  { %v589_v48 = vadd.f32 %v588_v11, %v477_v28 }
 0x19d   :  { %v1641_v13 = vpop.f32.mrf.mxu0 }
 0x19e   :  { %v615_v58 = vmul.f32 0.2, %v589_v48 }
 0x1a0   :  { %v631_v1 = vmax.f32 %v589_v48, %v615_v58 }
 0x1a3   :  { %v591_v14 = vpop.f32.mrf.mxu2 }
 0x1a4   :  { %v592_v42 = vadd.f32 %v591_v14, %v482_v22  ;;  %v658_v14 = vpack.c.bf16 %v631_v1, %v630_v5  ;;  %v432_v22 = vpop.permute.xlu0 %431 }
 0x1a5   :  { %v1643_v15 = vpop.f32.mrf.mxu0 }
 0x1a6   :  { %v616_v54 = vmul.f32 0.2, %v592_v42  ;;  %v574_v8 = vadd.f32 %v1643_v15, %v447_v7 }
 0x1a8   :  { %v632_v46 = vmax.f32 %v592_v42, %v616_v54 }
 0x1ab   :  { %v593_v40 = vpop.f32.mrf.mxu2 }
 0x1ac   :  { %v594_v62 = vadd.f32 %v593_v40, %v487_v25  ;;  %v572_v40 = vadd.f32 %v1641_v13, %v442_v63  ;;  %v686_v42 = vpop.permute.xlu0 %685 }
 0x1ad   :  { %v576_v19 = vpop.f32.mrf.mxu0 }
 0x1ae   :  { %v617_v35 = vmul.f32 0.2, %v594_v62  ;;  %v577_v6 = vadd.f32 %v576_v19, %v452_v50  ;;  %v608_v23 = vmul.f32 0.2, %v572_v40 }
 0x1b0   :  { %v633_v44 = vmax.f32 %v594_v62, %v617_v35  ;;  %v624_v28 = vmax.f32 %v572_v40, %v608_v23  ;;  %v1118_v62 = vld [vmem:[%s1702_s5 + $0x30] sm:$0xff] }
 0x1b2   :  { %v659_v4 = vpack.c.bf16 %v633_v44, %v632_v46 }
 0x1b3   :  { %v596_v17 = vpop.f32.mrf.mxu2 }
 0x1b4   :  { %v597_v12 = vadd.f32 %v596_v17, %v492_v21  ;;  %v609_v21 = vmul.f32 0.2, %v574_v8 }
 0x1b5   :  { %v578_v52 = vpop.f32.mrf.mxu0 }
 0x1b6   :  { %v618_v45 = vmul.f32 0.2, %v597_v12  ;;  %v579_v2 = vadd.f32 %v578_v52, %v457_v0  ;;  %v567_v52 = vadd.f32 %v1637_v27, %v432_v22  ;;  %v625_v25 = vmax.f32 %v574_v8, %v609_v21  ;;  %v1112_v27 = vld [vmem:[%s1702_s5] sm:$0xff] }
 0x1b8   :  { %v634_v55 = vmax.f32 %v597_v12, %v618_v45  ;;  %v611_v9 = vmul.f32 0.2, %v579_v2  ;;  %v1116_v12 = vld [vmem:[%s1702_s5 + $0x20] sm:$0xff] }
 0x1ba   :  { %v627_v19 = vmax.f32 %v579_v2, %v611_v9 }
 0x1bb   :  { %v598_v60 = vpop.f32.mrf.mxu2 }
 0x1bc   :  { %v599_v31 = vadd.f32 %v598_v60, %v497_v20 }
 0x1bd   :  { %v581_v29 = vpop.f32.mrf.mxu0 }
 0x1be   :  { %v619_v38 = vmul.f32 0.2, %v599_v31  ;;  %v582_v30 = vadd.f32 %v581_v29, %v462_v43  ;;  %v681_v43 = vpop.permute.xlu2 %680 }
 0x1c0   :  { %v635_v36 = vmax.f32 %v599_v31, %v619_v38  ;;  %v612_v56 = vmul.f32 0.2, %v582_v30  ;;  %v655_v31 = vpack.c.bf16 %v625_v25, %v624_v28  ;;  %v1115_v38 = vld [vmem:[%s1702_s5 + $0x18] sm:$0xff] }
 0x1c2   :  { %v660_v61 = vpack.c.bf16 %v635_v36, %v634_v55  ;;  %v628_v17 = vmax.f32 %v582_v30, %v612_v56 }
 0x1c3   :  { %v601_v24 = vpop.f32.mrf.mxu2 }
 0x1c4   :  { %v602_v26 = vadd.f32 %v601_v24, %v502_v16  ;;  %v610_v16 = vmul.f32 0.2, %v577_v6 }
 0x1c5   :  { %v583_v51 = vpop.f32.mrf.mxu0 }
 0x1c6   :  { %v620_v33 = vmul.f32 0.2, %v602_v26  ;;  %v584_v59 = vadd.f32 %v583_v51, %v467_v37  ;;  %v626_v15 = vmax.f32 %v577_v6, %v610_v16  ;;  %v1114_v37 = vld [vmem:[%s1702_s5 + $0x10] sm:$0xff] }
 0x1c8   :  { %v636_v47 = vmax.f32 %v602_v26, %v620_v33  ;;  %v613_v3 = vmul.f32 0.2, %v584_v59  ;;  %v656_v13 = vpack.c.bf16 %v627_v19, %v626_v15  ;;  %v606_v26 = vmul.f32 0.2, %v567_v52  ;;  %v1113_v33 = vld [vmem:[%s1702_s5 + $0x8] sm:$0xff] }
 0x1ca   :  { %v629_v11 = vmax.f32 %v584_v59, %v613_v3 }
 0x1cb   :  { %v603_v32 = vpop.f32.mrf.mxu2 }
 0x1cc   :  { %v604_v34 = vadd.f32 %v603_v32, %v507_v18  ;;  %v437_v18 = vpop.permute.xlu1 %436  ;;  %v657_v60 = vpack.c.bf16 %v629_v11, %v628_v17 }
 0x1cd   :  { %v569_v20 = vadd.f32 %v1639_v10, %v437_v18  ;;  %v622_v10 = vmax.f32 %v567_v52, %v606_v26 }
 0x1ce   :  { %v621_v39 = vmul.f32 0.2, %v604_v34 }
 0x1cf   :  { %v607_v24 = vmul.f32 0.2, %v569_v20 }
 0x1d0   :  { %v637_v57 = vmax.f32 %v604_v34, %v621_v39  ;;  %v1117_v34 = vld [vmem:[%s1702_s5 + $0x28] sm:$0xff]  ;;  %v1119_v39 = vld [vmem:[%s1702_s5 + $0x38] sm:$0xff] }
 0x1d1   :  { %v623_v29 = vmax.f32 %v569_v20, %v607_v24 }
 0x1d2   :  { %v661_v49 = vpack.c.bf16 %v637_v57, %v636_v47  ;;  %v696_v47 = vpop.permute.xlu2 %695  ;;  %v701_v57 = vpop.permute.xlu0 %700 }
 0x1d3   :  { %v654_v32 = vpack.c.bf16 %v623_v29, %v622_v10 }
 0x1d4   :  { %806 = vmatpush.bf16.msra.mxu1 %v661_v49  ;;  %1128 = vmatpush.bf16.msra.mxu3 %v661_v49  ;;  %v691_v45 = vpop.permute.xlu1 %690 }
 0x1d8   :  { %807 = vmatpush.bf16.msra.mxu1 %v660_v61  ;;  %1129 = vmatpush.bf16.msra.mxu3 %v660_v61 }
 0x1da   :  { %v711_v35 = vpop.permute.xlu2 %710  ;;  %v1673_v36 = vpop.permute.xlu0 %715 }
 0x1dc   :  { %808 = vmatpush.bf16.msra.mxu1 %v659_v4  ;;  %1130 = vmatpush.bf16.msra.mxu3 %v659_v4  ;;  %v706_v48 = vpop.permute.xlu1 %705 }
 0x1e0   :  { %809 = vmatpush.bf16.msra.mxu1 %v658_v14  ;;  %1131 = vmatpush.bf16.msra.mxu3 %v658_v14 }
 0x1e2   :  { %v726_v51 = vpop.permute.xlu2 %725  ;;  %v731_v54 = vpop.permute.xlu0 %730 }
 0x1e4   :  { %810 = vmatpush.bf16.msra.mxu1 %v657_v60  ;;  %1132 = vmatpush.bf16.msra.mxu3 %v657_v60  ;;  %v721_v50 = vpop.permute.xlu1 %720 }
 0x1e8   :  { %811 = vmatpush.bf16.msra.mxu1 %v656_v13  ;;  %1133 = vmatpush.bf16.msra.mxu3 %v656_v13 }
 0x1ea   :  { %v1677_v59 = vpop.permute.xlu2 %740  ;;  %v1679_v63 = vpop.permute.xlu0 %745 }
 0x1ec   :  { %812 = vmatpush.bf16.msra.mxu1 %v655_v31  ;;  %1134 = vmatpush.bf16.msra.mxu3 %v655_v31  ;;  %v1675_v58 = vpop.permute.xlu1 %735 }
 0x1f0   :  { %813 = vmatpush.bf16.msra.mxu1 %v654_v32  ;;  %1135 = vmatpush.bf16.msra.mxu3 %v654_v32 }
 0x1f2   :  { %v1683_v0 = vpop.permute.xlu2 %755  ;;  %v906_v1 = vpop.permute.xlu0 %905 }
 0x1f3   :  { %814 = vmatmul.bf16.vlgmr.msra.gmra.mxu1 %v1112_v27  ;;  %834 = vmatmul.bf16.vlgmr.msra.gmra.mxu3 %v1116_v12 }
 0x1f4   :  { %v1681_v46 = vpop.permute.xlu1 %750 }
 0x1fa   :  { %v916_v5 = vpop.permute.xlu2 %915  ;;  %v921_v56 = vpop.permute.xlu0 %920 }
 0x1fc   :  { %v911_v4 = vpop.permute.xlu1 %910 }
 0x202   :  { %v931_v22 = vpop.permute.xlu2 %930  ;;  %v936_v25 = vpop.permute.xlu0 %935 }
 0x203   :  { %819 = vmatmul.bf16.gmra.mxu1 %v1113_v33  ;;  %839 = vmatmul.bf16.gmra.mxu3 %v1117_v34 }
 0x204   :  { %v926_v20 = vpop.permute.xlu1 %925 }
 0x213   :  { %824 = vmatmul.bf16.gmra.mxu1 %v1114_v37  ;;  %844 = vmatmul.bf16.gmra.mxu3 %v1118_v62 }
 0x223   :  { %829 = vmatmul.bf16.gmra.mxu1 %v1115_v38  ;;  %849 = vmatmul.bf16.gmra.mxu3 %v1119_v39  ;;  %v941_v38 = vpop.permute.xlu1 %940 }
 0x270   :  { %v815_v49 = vpop.f32.mrf.mxu1 }
 0x271   :  { %v816_v8 = vadd.f32 %v815_v49, %v681_v43 }
 0x273   :  { %v855_v16 = vmul.f32 0.2, %v816_v8 }
 0x275   :  { %v871_v23 = vmax.f32 %v816_v8, %v855_v16 }
 0x276   :  { %v835_v53 = vpop.f32.mrf.mxu3 }
 0x277   :  { %v983_v10 = vmul.f32 %v906_v1, %v871_v23  ;;  %v836_v33 = vadd.f32 %v835_v53, %v721_v50  ;;  %v951_v1 = vpop.permute.xlu0 %950 }
 0x278   :  { %v817_v55 = vpop.f32.mrf.mxu1 }
 0x279   :  { %v818_v6 = vadd.f32 %v817_v55, %v686_v42 }
 0x27b   :  { %v856_v14 = vmul.f32 0.2, %v818_v6 }
 0x27d   :  { %v872_v21 = vmax.f32 %v818_v6, %v856_v14 }
 0x27e   :  { %v837_v44 = vpop.f32.mrf.mxu3 }
 0x27f   :  { %v984_v26 = vmul.f32 %v911_v4, %v872_v21  ;;  %v838_v39 = vadd.f32 %v837_v44, %v726_v51 }
 0x280   :  { %v820_v61 = vpop.f32.mrf.mxu1 }
 0x281   :  { %v821_v9 = vadd.f32 %v820_v61, %v691_v45  ;;  %v999_v34 = vadd.f32 %v984_v26, %v983_v10 }
 0x283   :  { %v857_v17 = vmul.f32 0.2, %v821_v9 }
 0x285   :  { %v873_v15 = vmax.f32 %v821_v9, %v857_v17 }
 0x286   :  { %v840_v41 = vpop.f32.mrf.mxu3 }
 0x287   :  { %v985_v32 = vmul.f32 %v916_v5, %v873_v15  ;;  %v841_v55 = vadd.f32 %v840_v41, %v731_v54 }
 0x288   :  { %v822_v30 = vpop.f32.mrf.mxu1 }
 0x289   :  { %v823_v40 = vadd.f32 %v822_v30, %v696_v47  ;;  %v1000_v42 = vadd.f32 %v999_v34, %v985_v32  ;;  %v865_v44 = vmul.f32 0.2, %v841_v55 }
 0x28b   :  { %v858_v19 = vmul.f32 0.2, %v823_v40  ;;  %v881_v17 = vmax.f32 %v841_v55, %v865_v44 }
 0x28d   :  { %v874_v28 = vmax.f32 %v823_v40, %v858_v19 }
 0x28e   :  { %v842_v2 = vpop.f32.mrf.mxu3 }
 0x28f   :  { %v986_v37 = vmul.f32 %v921_v56, %v874_v28  ;;  %v843_v50 = vadd.f32 %v842_v2, %v1675_v58 }
 0x290   :  { %v825_v3 = vpop.f32.mrf.mxu1 }
 0x291   :  { %v826_v18 = vadd.f32 %v825_v3, %v701_v57  ;;  %v946_v57 = vpop.permute.xlu2 %945  ;;  %v1001_v61 = vadd.f32 %v1000_v42, %v986_v37  ;;  %v864_v3 = vmul.f32 0.2, %v838_v39 }
 0x293   :  { %v859_v24 = vmul.f32 0.2, %v826_v18  ;;  %v880_v9 = vmax.f32 %v838_v39, %v864_v3 }
 0x295   :  { %v875_v27 = vmax.f32 %v826_v18, %v859_v24  ;;  %v992_v21 = vmul.f32 %v951_v1, %v880_v9 }
 0x296   :  { %v845_v7 = vpop.f32.mrf.mxu3 }
 0x297   :  { %v987_v45 = vmul.f32 %v926_v20, %v875_v27  ;;  %v846_v6 = vadd.f32 %v845_v7, %v1677_v59 }
 0x298   :  { %v827_v11 = vpop.f32.mrf.mxu1 }
 0x299   :  { %v828_v60 = vadd.f32 %v827_v11, %v706_v48  ;;  %v863_v48 = vmul.f32 0.2, %v836_v33  ;;  %v1002_v53 = vadd.f32 %v1001_v61, %v987_v45  ;;  %v866_v11 = vmul.f32 0.2, %v843_v50  ;;  %v961_v20 = vpop.permute.xlu2 %960 }
 0x29a   :  { %v867_v58 = vmul.f32 0.2, %v846_v6 }
 0x29b   :  { %v860_v29 = vmul.f32 0.2, %v828_v60  ;;  %v879_v51 = vmax.f32 %v836_v33, %v863_v48  ;;  %v882_v19 = vmax.f32 %v843_v50, %v866_v11 }
 0x29d   :  { %v876_v62 = vmax.f32 %v828_v60, %v860_v29  ;;  %v991_v40 = vmul.f32 %v946_v57, %v879_v51  ;;  %v994_v24 = vmul.f32 %v961_v20, %v882_v19  ;;  %v1021_v57 = vstv %s1705_s8 }
 0x29e   :  { %v847_v52 = vpop.f32.mrf.mxu3 }
 0x29f   :  { %v848_v54 = vadd.f32 %v847_v52, %v1679_v63  ;;  %v883_v63 = vmax.f32 %v846_v6, %v867_v58 }
 0x2a0   :  { %v830_v13 = vpop.f32.mrf.mxu1 }
 0x2a1   :  { %v831_v31 = vadd.f32 %v830_v13, %v711_v35  ;;  %v988_v35 = vmul.f32 %v931_v22, %v876_v62  ;;  %v868_v59 = vmul.f32 0.2, %v848_v54  ;;  %v966_v22 = vpop.permute.xlu0 %965 }
 0x2a2   :  { %v995_v28 = vmul.f32 %v966_v22, %v883_v63 }
 0x2a3   :  { %v861_v12 = vmul.f32 0.2, %v831_v31  ;;  %v1003_v56 = vadd.f32 %v1002_v53, %v988_v35 }
 0x2a5   :  { %v877_v47 = vmax.f32 %v831_v31, %v861_v12  ;;  %v976_v12 = vpop.permute.xlu2 %975 }
 0x2a6   :  { %v850_v43 = vpop.f32.mrf.mxu3 }
 0x2a7   :  { %v989_v4 = vmul.f32 %v936_v25, %v877_v47  ;;  %v851_v2 = vadd.f32 %v850_v43, %v1681_v46  ;;  %v884_v25 = vmax.f32 %v848_v54, %v868_v59 }
 0x2a8   :  { %v832_v49 = vpop.f32.mrf.mxu1 }
 0x2a9   :  { %v833_v30 = vadd.f32 %v832_v49, %v1673_v36  ;;  %v1004_v41 = vadd.f32 %v1003_v56, %v989_v4  ;;  %v956_v36 = vpop.permute.xlu1 %955  ;;  %v869_v52 = vmul.f32 0.2, %v851_v2 }
 0x2aa   :  { %v993_v23 = vmul.f32 %v956_v36, %v881_v17 }
 0x2ab   :  { %v862_v5 = vmul.f32 0.2, %v833_v30  ;;  %v885_v29 = vmax.f32 %v851_v2, %v869_v52 }
 0x2ad   :  { %v878_v8 = vmax.f32 %v833_v30, %v862_v5  ;;  %v997_v33 = vmul.f32 %v976_v12, %v885_v29 }
 0x2ae   :  { %v852_v16 = vpop.f32.mrf.mxu3 }
 0x2af   :  { %v990_v14 = vmul.f32 %v941_v38, %v878_v8  ;;  %v853_v60 = vadd.f32 %v852_v16, %v1683_v0  ;;  %v981_v0 = vpop.permute.xlu0 %980 }
 0x2b1   :  { %v1005_v18 = vadd.f32 %v1004_v41, %v990_v14  ;;  %v870_v26 = vmul.f32 0.2, %v853_v60  ;;  %v971_v31 = vpop.permute.xlu1 %970 }
 0x2b2   :  { %v996_v10 = vmul.f32 %v971_v31, %v884_v25 }
 0x2b3   :  { %v1006_v7 = vadd.f32 %v1005_v18, %v991_v40  ;;  %v886_v32 = vmax.f32 %v853_v60, %v870_v26 }
 0x2b5   :  { %v1007_v15 = vadd.f32 %v1006_v7, %v992_v21  ;;  %v998_v37 = vmul.f32 %v981_v0, %v886_v32 }
 0x2b7   :  { %v1008_v13 = vadd.f32 %v1007_v15, %v993_v23 }
 0x2b9   :  { %v1009_v46 = vadd.f32 %v1008_v13, %v994_v24 }
 0x2bb   :  { %v1010_v27 = vadd.f32 %v1009_v46, %v995_v28 }
 0x2bd   :  { %v1011_v34 = vadd.f32 %v1010_v27, %v996_v10 }
 0x2bf   :  { %v1012_v62 = vadd.f32 %v1011_v34, %v997_v33 }
 0x2c1   :  { %v1013_v38 = vadd.f32 %v1012_v62, %v998_v37 }
 0x2c3   :  { %v1014_v39 = vrot.slane %v1013_v38, 4 }
 0x2c5   :  { %v1015_v43 = vadd.f32 %v1014_v39, %v1013_v38 }
 0x2c7   :  { %v1016_v42 = vrot.slane %v1015_v43, 2 }
 0x2c9   :  { %v1017_v45 = vadd.f32 %v1016_v42, %v1015_v43 }
 0x2cb   :  { %v1018_v47 = vrot.slane %v1017_v45, 1 }
 0x2cd   :  { %v1019_v48 = vadd.f32 %v1018_v47, %v1017_v45 }
 0x2cf   :  { %v1022_v49 = vadd.f32 %v1021_v57, %v1019_v48 }
 0x2d1   :  { %1023 = vst [vmem:[#allocation3] sm:$0x1] %v1022_v49 }
 0x2d2   :  { %1034 = dma.vmem_to_hbm [thread:$0]  %s1030_s0, 16, %s1032_s6, [#allocation4]  }
 0x2d3   :  { %1185 = dma.done.wait [#allocation4], 16  }
 0x2d4   :  { %1186 = vsyncadd [#allocation4], 4294967280 }
 0x2d5   :  { %1039 = vsyncpa [#allocation4], 1 }

</bundles_post_ra>
